<compile_context>
chip_gen: v7x
topology: tpu7x:2x2x1
jax: 0.10.0
libtpu: 0.0.40
codegen_flags: <defaults>
</compile_context>

<pallas_src>
import jax
import jax.numpy as jnp
from jax.experimental import pallas as pl
from jax.experimental.pallas import tpu as pltpu

INPUT_SIZE = 5
HIDDEN_SIZE = 32
NUM_CLASSES = 2


def _round_up(n, m):
    return ((n + m - 1) // m) * m


def _mlp_kernel(xT_ref, w1t_ref, b1_ref, w2t_ref, b2_ref, o_ref):
    # fc1 (transposed): (H, IN) @ (IN, TB) -> (H, TB), f32 accumulate on MXU.
    h = jnp.dot(w1t_ref[...], xT_ref[...], preferred_element_type=jnp.float32)
    # bias broadcast along lanes + ReLU on the VPU.
    h = jnp.maximum(h + b1_ref[...], 0.0)
    # fc2 (transposed): (C, H) @ (H, TB) -> (C, TB).
    out = jnp.dot(w2t_ref[...], h, preferred_element_type=jnp.float32)
    out = out + b2_ref[...]
    o_ref[...] = out.astype(o_ref.dtype)


def sleepiness_nn_forward(x, w1, b1, w2, b2, *, block_b=512):
    """Forward pass of SleepinessNN.

    x:  (B, INPUT_SIZE)
    w1: (INPUT_SIZE, HIDDEN_SIZE)   b1: (HIDDEN_SIZE,)
    w2: (HIDDEN_SIZE, NUM_CLASSES)  b2: (NUM_CLASSES,)
    returns (B, NUM_CLASSES)
    """
    B = x.shape[0]

    # Batch tile: multiple of 128 (lane width); pad B up to a multiple of TB.
    B_pad = _round_up(max(B, 128), 128)
    TB = min(block_b, B_pad)
    B_pad = _round_up(B_pad, TB)

    # Lane-dense, transposed operands (layout plumbing done in the wrapper;
    # it's a few cheap XLA ops on tiny arrays).
    xT = jnp.zeros((INPUT_SIZE, B_pad), x.dtype).at[:, :B].set(x.T)
    w1t = w1.T                                   # (H, IN)
    b1c = b1.reshape(HIDDEN_SIZE, 1)             # broadcast along lanes
    w2t = w2.T                                   # (C, H)
    b2c = b2.reshape(NUM_CLASSES, 1)

    grid = (B_pad // TB,)

    outT = pl.pallas_call(
        _mlp_kernel,
        out_shape=jax.ShapeDtypeStruct((NUM_CLASSES, B_pad), x.dtype),
        grid=grid,
        in_specs=[
            # streamed, double-buffered batch tile of x^T
            pl.BlockSpec((INPUT_SIZE, TB), lambda i: (0, i)),
            # weights / biases: constant index_map -> VMEM-resident across grid
            pl.BlockSpec((HIDDEN_SIZE, INPUT_SIZE), lambda i: (0, 0)),
            pl.BlockSpec((HIDDEN_SIZE, 1), lambda i: (0, 0)),
            pl.BlockSpec((NUM_CLASSES, HIDDEN_SIZE), lambda i: (0, 0)),
            pl.BlockSpec((NUM_CLASSES, 1), lambda i: (0, 0)),
        ],
        out_specs=pl.BlockSpec((NUM_CLASSES, TB), lambda i: (0, i)),
        compiler_params=pltpu.CompilerParams(
            dimension_semantics=("parallel",),
        ),
    )(xT, w1t, b1c, w2t, b2c)

    return outT[:, :B].T


def init_params(key):
    """Deterministic synthetic parameters matching SleepinessNN.__init__ shapes."""
    k1, k2, k3, k4 = jax.random.split(key, 4)
    w1 = jax.random.normal(k1, (INPUT_SIZE, HIDDEN_SIZE), jnp.float32) * 0.1
    b1 = jax.random.normal(k2, (HIDDEN_SIZE,), jnp.float32) * 0.1
    w2 = jax.random.normal(k3, (HIDDEN_SIZE, NUM_CLASSES), jnp.float32) * 0.1
    b2 = jax.random.normal(k4, (NUM_CLASSES,), jnp.float32) * 0.1
    return w1, b1, w2, b2


def reference_forward(x, w1, b1, w2, b2):
    h = jnp.maximum(
        jnp.dot(x, w1, preferred_element_type=jnp.float32) + b1[None, :], 0.0
    )
    return jnp.dot(h, w2, preferred_element_type=jnp.float32) + b2[None, :]


if __name__ == "__main__":
    key = jax.random.PRNGKey(0)
    kx, kp = jax.random.split(key)

    # Small batch; block_b=128 still exercises a 2-step grid (B padded to 256).
    B = 200
    x = jax.random.normal(kx, (B, INPUT_SIZE), jnp.float32)
    w1, b1, w2, b2 = init_params(kp)

    out = sleepiness_nn_forward(x, w1, b1, w2, b2, block_b=128)
    out = jax.block_until_ready(out)

    ref = reference_forward(x, w1, b1, w2, b2)
    assert out.shape == (B, NUM_CLASSES)
    assert jnp.allclose(out, ref, atol=1e-4, rtol=1e-4)

    print("KERNEL_OK")
</pallas_src>

<mosaic_0001>
module attributes {stable_mosaic.version = 11 : i64} {
  func.func @_mlp_kernel(%arg0: i32, %arg1: memref<5x128xf32, #tpu.memory_space<vmem>>, %arg2: memref<32x5xf32, #tpu.memory_space<vmem>>, %arg3: memref<32x1xf32, #tpu.memory_space<vmem>>, %arg4: memref<2x32xf32, #tpu.memory_space<vmem>>, %arg5: memref<2x1xf32, #tpu.memory_space<vmem>>, %arg6: memref<2x128xf32, #tpu.memory_space<vmem>>) attributes {dimension_semantics = [#tpu.dimension_semantics<parallel>], iteration_bounds = array<i64: 2>, scalar_prefetch = 0 : i64, scratch_operands = 0 : i64, tpu.core_type = #tpu.core_type<tc>, window_params = [{transform_indices = @transform_0, window_bounds = array<i64: 5, 128>}, {pipeline_mode = #tpu.pipeline_mode<synchronous>, transform_indices = @transform_1, window_bounds = array<i64: 32, 5>}, {pipeline_mode = #tpu.pipeline_mode<synchronous>, transform_indices = @transform_2, window_bounds = array<i64: 32, 1>}, {pipeline_mode = #tpu.pipeline_mode<synchronous>, transform_indices = @transform_3, window_bounds = array<i64: 2, 32>}, {pipeline_mode = #tpu.pipeline_mode<synchronous>, transform_indices = @transform_4, window_bounds = array<i64: 2, 1>}, {transform_indices = @transform_5, window_bounds = array<i64: 2, 128>}]} {
    %c0 = arith.constant 0 : index
    %c0_0 = arith.constant 0 : index
    %0 = vector.load %arg2[%c0, %c0_0] : memref<32x5xf32, #tpu.memory_space<vmem>>, vector<32x5xf32>
    %c0_1 = arith.constant 0 : index
    %c0_2 = arith.constant 0 : index
    %1 = vector.load %arg1[%c0_1, %c0_2] : memref<5x128xf32, #tpu.memory_space<vmem>>, vector<5x128xf32>
    %cst = arith.constant dense<0.000000e+00> : vector<32x128xf32>
    %2 = tpu.matmul %0, %1, %cst {dimension_numbers = #tpu.dot_dimension_numbers<[1], [0], [0], [1], [0, 0, 1, 1], [], []>} : vector<32x5xf32>, vector<5x128xf32>, vector<32x128xf32> -> vector<32x128xf32>
    %c0_3 = arith.constant 0 : index
    %c0_4 = arith.constant 0 : index
    %3 = vector.load %arg3[%c0_3, %c0_4] : memref<32x1xf32, #tpu.memory_space<vmem>>, vector<32x1xf32>
    %4 = vector.broadcast %3 : vector<32x1xf32> to vector<32x128xf32>
    %5 = arith.addf %2, %4 : vector<32x128xf32>
    %cst_5 = arith.constant 0.000000e+00 : f32
    %6 = vector.broadcast %cst_5 : f32 to vector<32x128xf32>
    %7 = arith.maximumf %5, %6 : vector<32x128xf32>
    %c0_6 = arith.constant 0 : index
    %c0_7 = arith.constant 0 : index
    %8 = vector.load %arg4[%c0_6, %c0_7] : memref<2x32xf32, #tpu.memory_space<vmem>>, vector<2x32xf32>
    %cst_8 = arith.constant dense<0.000000e+00> : vector<2x128xf32>
    %9 = tpu.matmul %8, %7, %cst_8 {dimension_numbers = #tpu.dot_dimension_numbers<[1], [0], [0], [1], [0, 0, 1, 1], [], []>} : vector<2x32xf32>, vector<32x128xf32>, vector<2x128xf32> -> vector<2x128xf32>
    %c0_9 = arith.constant 0 : index
    %c0_10 = arith.constant 0 : index
    %10 = vector.load %arg5[%c0_9, %c0_10] : memref<2x1xf32, #tpu.memory_space<vmem>>, vector<2x1xf32>
    %11 = vector.broadcast %10 : vector<2x1xf32> to vector<2x128xf32>
    %12 = arith.addf %9, %11 : vector<2x128xf32>
    %c0_11 = arith.constant 0 : index
    %c0_12 = arith.constant 0 : index
    %13 = vector.load %arg6[%c0_11, %c0_12] : memref<2x128xf32, #tpu.memory_space<vmem>>, vector<2x128xf32>
    tpu.vector_store %arg6[%c0_11, %c0_12], %12 {strides = array<i32>} : memref<2x128xf32, #tpu.memory_space<vmem>>, vector<2x128xf32>,
    return
  }
  func.func @transform_0(%arg0: i32) -> (i32, i32) {
    %c0_i32 = arith.constant 0 : i32
    %c0_i32_0 = arith.constant 0 : i32
    return %c0_i32, %arg0 : i32, i32
  }
  func.func @transform_1(%arg0: i32) -> (i32, i32) {
    %c0_i32 = arith.constant 0 : i32
    %c0_i32_0 = arith.constant 0 : i32
    %c0_i32_1 = arith.constant 0 : i32
    return %c0_i32, %c0_i32_0 : i32, i32
  }
  func.func @transform_2(%arg0: i32) -> (i32, i32) {
    %c0_i32 = arith.constant 0 : i32
    %c0_i32_0 = arith.constant 0 : i32
    %c0_i32_1 = arith.constant 0 : i32
    return %c0_i32, %c0_i32_0 : i32, i32
  }
  func.func @transform_3(%arg0: i32) -> (i32, i32) {
    %c0_i32 = arith.constant 0 : i32
    %c0_i32_0 = arith.constant 0 : i32
    %c0_i32_1 = arith.constant 0 : i32
    return %c0_i32, %c0_i32_0 : i32, i32
  }
  func.func @transform_4(%arg0: i32) -> (i32, i32) {
    %c0_i32 = arith.constant 0 : i32
    %c0_i32_0 = arith.constant 0 : i32
    %c0_i32_1 = arith.constant 0 : i32
    return %c0_i32, %c0_i32_0 : i32, i32
  }
  func.func @transform_5(%arg0: i32) -> (i32, i32) {
    %c0_i32 = arith.constant 0 : i32
    %c0_i32_0 = arith.constant 0 : i32
    return %c0_i32, %arg0 : i32, i32
  }
}

</mosaic_0001>

<bundles_post_ra>
// kernel: tpu_custom_call.1
= control target key start
LH: loop header
LB: loop body
LE: loop exit
PB: predicated region body
PF: predicated region fallthrough
CT: control target
= control target key end

     0   :  { %10 = vsyncpa [#allocation3], 0  ;;  %s839_s0 = inlined_call_operand.vmem [shape: f32[5,256], index: 0, kind: input, shape index: {}]   ;;  %s840_s1 = inlined_call_operand.vmem [shape: f32[32,5], index: 1, kind: input, shape index: {}]   ;;  %s841_s2 = inlined_call_operand.vmem [shape: f32[32,1], index: 2, kind: input, shape index: {}]   ;;  %s842_s3 = inlined_call_operand.vmem [shape: f32[2,32], index: 3, kind: input, shape index: {}]   ;;  %s843_s4 = inlined_call_operand.vmem [shape: f32[2,1], index: 4, kind: input, shape index: {}]   ;;  %s844_s5 = inlined_call_operand.hbm [shape: f32[2,256], index: 5, kind: output, shape index: {}]  }
   0x1   :  { %12 = vsyncpa [#allocation3 + $0x1], 0  ;;  %s705_s18 = smov 0   ;;  %s707_s19 = smov 0  }
   0x2   :  { %s709_s20 = smov 0   ;;  %s711_s21 = smov 0  }
   0x3 LB: > { %s726_s22 = sadd.s32 4294967295, %s668_s21   ;;  %s510_s23 = sadd.s32 4294967294, %s668_s21   ;;  %s668_s21 = sphi %s711_s21, %s850_s21   ;;  %s664_s20 = sphi %s709_s20, %s849_s20   ;;  %s660_s19 = sphi %s707_s19, %s848_s19   ;;  %s656_s18 = sphi %s705_s18, %s847_s18  }
   0x4   : > { %s730_s24 = sadd.s32 1, %s668_s21   ;;  %s135_s25 = sadd.s32 1, %s664_s20 }
   0x5   : > { %s132_s26 = ssub.s32 %s668_s21, %s730_s24  ;;  %p145_p0 = scmp.ne.s32.totalorder %s664_s20, %s660_s19 }
   0x6   : > { %p133_p1 = scmp.eq.s32.totalorder %s132_s26, 0  ;;  %p146_p2 = scmp.eq.s32.totalorder %s726_s22, 1 }
   0x7   : > { %p151_p3 = scmp.ne.s32.totalorder %s660_s19, %s656_s18  ;;  %p152_p4 = scmp.eq.s32.totalorder %s510_s23, 1 }
   0x8   : > { %s741_s27 = scalar_select %p133_p1, %s664_s20, %s135_s25  }
   0x9   : > { %p743_p5 = por %p146_p2, %p145_p0  ;;  %p747_p6 = por %p152_p4, %p151_p3 }
   0xa   : > { %p513_p7 = scmp.ge.s32.totalorder %s668_s21, 1  ;;  %p189_p8 = scmp.lt.s32.totalorder %s668_s21, 3 }
   0xc   : > { %p190_p9 = pnand %p513_p7, %p189_p8 }
   0xd   : > { %p216_p10 = scmp.lt.s32.totalorder (!%p190_p9), %s726_s22, 1  ;;  %v220_v0 = vld [vmem:[%s840_s1] sm:$0xff] (!%p190_p9)  ;;  %vm249_vm0 = vcmask (!%p190_p9), 39936   ;;  %v670_v2 = vmov (!%p190_p9), 0   ;;  %v227_v3 = vld [vmem:[%s841_s2 + $0x10] sm:$0xff] (!%p190_p9)  ;;  %vm262_vm1 = vcmask (!%p190_p9), 1044480  }
   0xe   : > { %193 = sbr.rel (%p190_p9) target bundleno = 482 (0x1e2), region = 40  ;;  %538 = vmatprep.mubr.msk.f32.mxu0 (!%p190_p9), %vm249_vm0, %v220_v0  ;;  %v225_v1 = vld [vmem:[%s841_s2] sm:$0xff] (!%p190_p9)  ;;  %604 = vset.pattern.permute.xlu0 (!%p190_p9), %v670_v2  ;;  %v226_v4 = vld [vmem:[%s841_s2 + $0x8] sm:$0xff] (!%p190_p9)  ;;  %v228_v5 = vld [vmem:[%s841_s2 + $0x18] sm:$0xff] (!%p190_p9)  ;;  %v671_v11 = vmov (!%p190_p9), 0.0|0.0   ;;  %vm672_vm2 = vmmov (!%p190_p9), 0  }
   0xf   : > { %605 = vset.pattern.permute.xlu1 (!%p190_p9), %v670_v2  ;;  %231 = vperm.xlu0 (!%p190_p9), %604, %v225_v1   ;;  %v221_v7 = vld [vmem:[%s840_s1 + $0x8] sm:$0xff] (!%p190_p9)  ;;  %v222_v8 = vld [vmem:[%s840_s1 + $0x10] sm:$0xff] (!%p190_p9)  ;;  %v356_v9 = vld [vmem:[%s843_s4] sm:$0x3] (!%p190_p9)  ;;  %v673_v12 = vmov (!%p190_p9), 0.0   ;;  %vm362_vm3 = vcmask (!%p190_p9), 261120  }
  0x10   : > { %241 = vperm.xlu1 (!%p190_p9), %605, %v227_v3   ;;  %v223_v10 = vld [vmem:[%s840_s1 + $0x18] sm:$0xff] (!%p190_p9)  ;;  %555 = vmatprep.subr.bf16.mxu1 (!%p190_p9), %v671_v11  ;;  %v355_v31 = vld [vmem:[%s842_s3] sm:$0x3] (!%p190_p9)  ;;  %s213_s14 = sand.u32 (!%p190_p9), 1, %s660_s19   ;;  %s523_s16 = sshll.u32 (!%p190_p9), %s726_s22, 5 }
  0x11   : > { %552 = vmatprep.mubr.msk.f32.mxu1 (!%p190_p9), %vm672_vm2, %v673_v12  ;;  %s514_s15 = sshll.u32 (!%p190_p9), %s213_s14, 1  ;;  %s797_s30 = scalar_lea.hbm (!%p190_p9), %s844_s5, %s523_s16 }
  0x12   : > { %s438_s6 = scalar_lea.sflag (!%p190_p9), [#allocation3], %s213_s14 }
  0x13   : > { %236 = vperm.xlu0 (!%p190_p9), %604, %v226_v4  }
  0x14   : > { %246 = vperm.xlu1 (!%p190_p9), %605, %v228_v5  }
  0x15   : > { %s217_s9 = scalar_select %p216_p10, %s726_s22, 1 }
  0x16   : > { %s674_s22 = smov [#allocation2]  }
  0x17   : > { %s515_s12 = sshll.u32 %s217_s9, 3  ;;  %359 = vperm.xlu0 %604, %v356_v9   ;;  %s610_s8 = sshll.u32 %s674_s22, 4  ;;  %s611_s8 = int_to_ptr.vmem [resolvable:$false] %s610_s8 }
  0x18   : > { %s219_s17 = scalar_lea.vmem %s839_s0, %s515_s12  ;;  %s612_s9 = scalar_lea.vmem %s611_s8, 64 }
  0x19   : > { %v224_v6 = vld [vmem:[%s219_s17] sm:$0x1f]  ;;  %s215_s17 = scalar_lea.vmem [#allocation2], %s514_s15 }
  0x1a   : > { %536 = vmatprep.subr.msk.mxu0 %vm262_vm1, %v224_v6  ;;  %s451_s23 = sshll.u32 %s215_s17, 4  ;;  %s799_s23 = int_to_ptr.vmem [resolvable:$true] %s451_s23 }
  0x1b   : > { %537 = vmatpush3.msk.msra.mxu0 %vm262_vm1, %v224_v6  ;;  %s606_s7 = scalar_lea.vmem %s799_s23, 32  ;;  %p613_p0 = scmp.lt.s32.totalorder %s799_s23, %s611_s8 }
  0x1c   : > { %539 = vmatmul.mubr.msk.f32.vlgmr.msra.gmra.mrb[0].mxu0 %vm249_vm0, %v221_v7  ;;  %p607_p11 = scmp.ne.s32.totalorder %s799_s23, %s606_s7  ;;  %p614_p1 = scmp.lt.s32.totalorder %s612_s9, %s606_s7 }
  0x1d   : > { %541 = vmatprep.mubr.msk.f32.mxu0 %vm249_vm0, %v222_v8 }
  0x1e   : > { %p608_p12 = pnand %p607_p11, %p743_p5  ;;  %p615_p2 = por %p614_p1, %p613_p0 }
  0x20   : > { %542 = vmatmul.mubr.msk.f32.gmra.mrb[2].mxu0 %vm249_vm0, %v223_v10  ;;  %p609_p13 = pneg %p608_p12 }
  0x22   : > { %p616_p3 = pnand %p615_p2, %p609_p13 }
  0x8e   : > { %v232_v13 = vpop.permute.xlu0 %231 }
  0x8f   : > { %v242_v14 = vpop.permute.xlu1 %241 }
  0x92   : > { %v237_v15 = vpop.permute.xlu0 %236 }
  0x93   : > { %v247_v21 = vpop.permute.xlu1 %246 }
  0x96   : > { %v360_v32 = vpop.permute.xlu0 %359 }
  0xef   : > { %v540_v16 = vpop.f32.mrb[0].mxu0 }
  0xf0   : > { %v338_v17 = vadd.f32 %v540_v16, %v237_v15  ;;  %v332_v18 = vpop.f32.mrb[1].mxu0 }
  0xf1   : > { %v333_v19 = vadd.f32 %v332_v18, %v232_v13 }
  0xf2   : > { %v352_v20 = vmax.f32 %v338_v17, 0.0 }
  0xf3   : > { %v351_v22 = vmax.f32 %v333_v19, 0.0  ;;  %v543_v23 = vpop.f32.mrb[2].mxu0 }
  0xf4   : > { %v348_v24 = vadd.f32 %v543_v23, %v247_v21  ;;  %v342_v25 = vpop.f32.mrb[3].mxu0 }
  0xf5   : > { %v343_v26 = vadd.f32 %v342_v25, %v242_v14  ;;  %v556_v27 = vpack.c.bf16 %v352_v20, %v351_v22 }
  0xf6   : > { %v354_v28 = vmax.f32 %v348_v24, 0.0 }
  0xf7   : > { %v353_v29 = vmax.f32 %v343_v26, 0.0  ;;  %557 = vmatpush3.bf16.msra.mxu1 %v556_v27 }
  0xf8   : > { %558 = vmatprep.subr.bf16.mxu1 %v671_v11 }
  0xf9   : > { %v559_v30 = vpack.c.bf16 %v354_v28, %v353_v29 }
  0xfb   : > { %560 = vmatpush3.bf16.msra.mxu1 %v559_v30 }
  0xfe   : > { %553 = vmatmul.mubr.msk.f32.vlgmr.msra.gmra.mrb[0].mxu1 %vm362_vm3, %v355_v31 }
 0x1d1   : > { %v432_v33 = vpop.f32.mrb[0].mxu1 }
 0x1d2   : > { %v433_v34 = vadd.f32 %v432_v33, %v360_v32  ;;  %v554_v35 = vpop.f32.mrb[1].mxu1 }
 0x1d4   : > { %436 = vst [vmem:[%s215_s17] sm:$0x3] %v433_v34 }
 0x1d5   : > { %619 = shalt.err (!%p616_p3)
}
 0x1d6   : > { %s620_s10 = scalar_lea.hbm %s797_s30, 32  ;;  %s624_s13 = scalar_lea.hbm %s844_s5, 64 }
 0x1d7   : > { %p621_p4 = scmp.ne.s32.totalorder %s797_s30, %s620_s10  ;;  %p625_p9 = scmp.lt.u32.totalorder %s797_s30, %s844_s5 }
 0x1d8   : > { %p626_p10 = scmp.lt.u32.totalorder %s624_s13, %s620_s10  ;;  %p628_p12 = scmp.lt.u32.totalorder %s620_s10, %s797_s30 }
 0x1d9   : > { %p622_p7 = pnand %p621_p4, %p743_p5 }
 0x1da   : > { %p627_p11 = por %p626_p10, %p625_p9 }
 0x1db   : > { %p623_p8 = pneg %p622_p7 }
 0x1dc   : > { %p629_p13 = por %p628_p12, %p627_p11 }
 0x1de   : > { %p630_p0 = pnand %p629_p13, %p623_p8 }
 0x1e0   : > { %633 = shalt.err (!%p630_p0)
}
 0x1e1   : > { %561 = dma.vmem_to_hbm [thread:$0]  (%p743_p5), %s799_s23, 32, %s797_s30, %s438_s6  }
 0x1e2 PF: > { %p567_p1 = scmp.ge.s32.totalorder %s668_s21, 2  ;;  %s463_s16 = sand.u32 1, %s656_s18  }
 0x1e3   : > { %s464_s17 = scalar_lea.sflag [#allocation3], %s463_s16 }
 0x1e4   : > { %p564_p2 = pnand %p567_p1, %p747_p6 }
 0x1e6   : > { %651 = dma.done.wait (!%p564_p2), %s464_s17, 32  }
 0x1e7   : > { %653 = vsyncadd (!%p564_p2), %s464_s17, 4294967264  ;;  %p15_p3 = scmp.ge.s32.totalorder %s730_s24, 4   ;;  %s847_s18 = smov %s660_s19 }
 0x1e8   : > { %s848_s19 = smov %s664_s20  ;;  %s849_s20 = smov %s741_s27 }
 0x1e9   : > { %s850_s21 = smov %s730_s24  ;;  %17 = sbr.rel (!%p15_p3) target bundleno = 3 (0x3), region = 75 }
 0x1f0   :  { %469 = vsyncpa [#allocation3], 1 }
 0x1f1   :  { %471 = vsyncpa [#allocation3 + $0x1], 1 }

</bundles_post_ra>
